<compile_context>
chip_gen: v5e
topology: v5e:2x2
jax: 0.10.0
libtpu: 0.0.40
codegen_flags: <defaults>
</compile_context>

<pallas_src>
import functools

import jax
import jax.numpy as jnp
from jax.experimental import pallas as pl
from jax.experimental.pallas import tpu as pltpu

_LANES = 128
_SUB = 8                 # rows per sub-chunk (one f32 vreg)
_CHUNK = 4 * _SUB        # rows per inner-loop iteration (4 interleaved accumulators)
_PAD_LOGIT = -100.0      # padded logit -> loss is exactly 0 in f32
_TARGET_TM = 2048        # ~1 MiB of f32 per input block


def _round_up(a, b):
    return ((a + b - 1) // b) * b


def _weighted_bce(x, y, obj, pw, nw):
    # numerically-stable BCE-with-logits, computed in f32 registers
    loss = jnp.maximum(x, 0.0) - x * y + jnp.log(1.0 + jnp.exp(-jnp.abs(x)))
    w = nw + (pw - nw) * obj          # == pw*obj + nw*(1-obj), one FMA
    return loss * w


def _sub_loss(x_ref, y_ref, obj_ref, r0, pw, nw):
    x = x_ref[pl.ds(r0, _SUB), :].astype(jnp.float32)
    y = y_ref[pl.ds(r0, _SUB), :].astype(jnp.float32)
    o = obj_ref[pl.ds(r0, _SUB), :].astype(jnp.float32)
    return _weighted_bce(x, y, o, pw, nw)


def _bce_reduce_kernel(x_ref, y_ref, obj_ref, out_ref, *, pw, nw, tm, rows_pad):
    """One grid step: reduce a (tm,128) block to an (8,128) partial-sum tile."""
    i = pl.program_id(0)
    limit = rows_pad - i * tm          # valid rows remaining in this block (scalar)

    def accumulate(r0, acc):
        wl = _sub_loss(x_ref, y_ref, obj_ref, r0, pw, nw)
        # scalar-gated select: drops stale OOB rows of a ragged last block
        # (jnp.where, not multiply, so garbage NaNs cannot leak in)
        return acc + jnp.where(r0 < limit, wl, 0.0)

    zero = jnp.zeros((_SUB, _LANES), jnp.float32)
    accs = (zero, zero, zero, zero)
    n_outer = tm // _CHUNK
    if n_outer:
        def body(k, accs):
            base = pl.multiple_of(k * _CHUNK, _CHUNK)
            return tuple(
                accumulate(pl.multiple_of(base + _SUB * s, _SUB), accs[s])
                for s in range(4))
        accs = jax.lax.fori_loop(0, n_outer, body, accs, unroll=2)

    accs = list(accs)
    for s in range((tm % _CHUNK) // _SUB):   # static remainder (< 4 sub-chunks)
        accs[s] = accumulate(n_outer * _CHUNK + _SUB * s, accs[s])

    out_ref[...] = (accs[0] + accs[1]) + (accs[2] + accs[3])


def _bce_elementwise_kernel(x_ref, y_ref, obj_ref, out_ref, *, pw, nw, tm):
    """reduction='none': stream the block in 8-row chunks (bounded live range)."""
    def emit(r0):
        wl = _sub_loss(x_ref, y_ref, obj_ref, r0, pw, nw)
        out_ref[pl.ds(r0, _SUB), :] = wl.astype(out_ref.dtype)

    n_outer = tm // _CHUNK
    if n_outer:
        def body(k, carry):
            base = pl.multiple_of(k * _CHUNK, _CHUNK)
            for s in range(4):
                emit(pl.multiple_of(base + _SUB * s, _SUB))
            return carry
        jax.lax.fori_loop(0, n_outer, body, 0, unroll=2)

    for s in range((tm % _CHUNK) // _SUB):
        emit(n_outer * _CHUNK + _SUB * s)


def _sublane_gran(*arrs):
    # minimal sublane multiple so BlockSpecs stay legal for narrow dtypes
    g = 8
    for a in arrs:
        g = max(g, 32 // jnp.dtype(a.dtype).itemsize)
    return g


def _pick_tm(rows_pad, gran):
    if rows_pad <= 64:
        return rows_pad                       # single small block
    steps = max(2, pl.cdiv(rows_pad, _TARGET_TM))
    if steps <= 8 and steps % 2:
        steps += 1                            # even split -> balanced v7x TensorCores
    tm = _round_up(pl.cdiv(rows_pad, steps), max(32, gran))
    return min(tm, rows_pad)


def _to_rows(a, rows_pad, pad_value):
    flat = a.reshape(-1)
    pad = rows_pad * _LANES - flat.shape[0]
    if pad:
        flat = jnp.pad(flat, (0, pad), constant_values=pad_value)
    return flat.reshape(rows_pad, _LANES)


def bce_with_logits_loss(x, label, label_obj, positive_weight=1.0,
                         negative_weight=0.25, reduction="mean"):
    """Forward of BCEWithLogitsLoss(positive_weight, negative_weight, reduction)."""
    assert x.shape == label.shape == label_obj.shape
    n = int(x.size)

    gran = _sublane_gran(x, label, label_obj)
    rows_pad = max(gran, _round_up(pl.cdiv(n, _LANES), gran))
    tm = _pick_tm(rows_pad, gran)
    grid = (pl.cdiv(rows_pad, tm),)           # last block may be ragged

    # padded logits = -100 -> exactly zero loss; label/obj pad = 0.
    # (labels could additionally be cast to bf16 here to cut input bandwidth;
    #  kept in their given dtype to preserve exact PyTorch numerics.)
    x2 = _to_rows(x, rows_pad, _PAD_LOGIT)
    y2 = _to_rows(label, rows_pad, 0.0)
    o2 = _to_rows(label_obj, rows_pad, 0.0)

    in_specs = [pl.BlockSpec((tm, _LANES), lambda i: (i, 0)) for _ in range(3)]
    params = pltpu.CompilerParams(dimension_semantics=("parallel",))
    pw = float(positive_weight)
    nw = float(negative_weight)

    if reduction == "none":
        out = pl.pallas_call(
            functools.partial(_bce_elementwise_kernel, pw=pw, nw=nw, tm=tm),
            out_shape=jax.ShapeDtypeStruct((rows_pad, _LANES), x.dtype),
            grid_spec=pltpu.PrefetchScalarGridSpec(
                num_scalar_prefetch=0, grid=grid, in_specs=in_specs,
                out_specs=pl.BlockSpec((tm, _LANES), lambda i: (i, 0))),
            compiler_params=params,
        )(x2, y2, o2)
        return out.reshape(-1)[:n].reshape(x.shape)

    # 'mean' / 'sum': per-block (8,128) partial sums, finished in the wrapper
    partials = pl.pallas_call(
        functools.partial(_bce_reduce_kernel, pw=pw, nw=nw, tm=tm,
                          rows_pad=rows_pad),
        out_shape=jax.ShapeDtypeStruct((grid[0] * _SUB, _LANES), jnp.float32),
        grid_spec=pltpu.PrefetchScalarGridSpec(
            num_scalar_prefetch=0, grid=grid, in_specs=in_specs,
            out_specs=pl.BlockSpec((_SUB, _LANES), lambda i: (i, 0))),
        compiler_params=params,
    )(x2, y2, o2)

    total = jnp.sum(partials)
    if reduction == "mean":
        return total / n
    return total  # 'sum'


def _reference(x, label, label_obj, positive_weight=1.0, negative_weight=0.25,
               reduction="mean"):
    # pure-JAX reference mirroring the PyTorch forward
    loss = jnp.logaddexp(0.0, x) - x * label
    loss = (loss * label_obj * positive_weight
            + loss * (1.0 - label_obj) * negative_weight)
    if reduction == "mean":
        return jnp.mean(loss)
    if reduction == "sum":
        return jnp.sum(loss)
    return loss


if __name__ == "__main__":
    key = jax.random.PRNGKey(0)
    kx, kl, ko = jax.random.split(key, 3)

    # shape implied by the detection-loss usage: (batch, channels, H, W)
    B, C, H, W = 2, 4, 16, 16
    x = jax.random.normal(kx, (B, C, H, W), dtype=jnp.float32)
    label = jax.random.bernoulli(kl, 0.5, (B, C, H, W)).astype(jnp.float32)
    label_obj = jax.random.bernoulli(ko, 0.3, (B, C, H, W)).astype(jnp.float32)

    # default reduction='mean' (module default)
    loss_mean = jax.block_until_ready(bce_with_logits_loss(x, label, label_obj))
    ref_mean = _reference(x, label, label_obj)
    assert jnp.allclose(loss_mean, ref_mean, atol=1e-5, rtol=1e-5), "mean mismatch"

    # reduction='sum'
    loss_sum = jax.block_until_ready(
        bce_with_logits_loss(x, label, label_obj, reduction="sum"))
    ref_sum = _reference(x, label, label_obj, reduction="sum")
    assert jnp.allclose(loss_sum, ref_sum, atol=1e-4, rtol=1e-5), "sum mismatch"

    # reduction='none'
    loss_none = jax.block_until_ready(
        bce_with_logits_loss(x, label, label_obj, reduction="none"))
    ref_none = _reference(x, label, label_obj, reduction="none")
    assert loss_none.shape == x.shape
    assert jnp.allclose(loss_none, ref_none, atol=1e-5, rtol=1e-5), "none mismatch"

    # non-128-aligned size: exercises the 8-row padding + zero-loss pad values
    shp2 = (3, 5, 7, 11)
    x2 = jax.random.normal(kx, shp2, dtype=jnp.float32)
    l2 = jax.random.bernoulli(kl, 0.5, shp2).astype(jnp.float32)
    o2 = jax.random.bernoulli(ko, 0.3, shp2).astype(jnp.float32)
    got2 = jax.block_until_ready(bce_with_logits_loss(x2, l2, o2))
    assert jnp.allclose(got2, _reference(x2, l2, o2), atol=1e-5, rtol=1e-5), \
        "padded-size mismatch"

    # multi-block grid with a ragged last block (exercises the OOB-row gate)
    shp3 = (2, 3, 40, 40)
    x3 = jax.random.normal(kx, shp3, dtype=jnp.float32)
    l3 = jax.random.bernoulli(kl, 0.5, shp3).astype(jnp.float32)
    o3 = jax.random.bernoulli(ko, 0.3, shp3).astype(jnp.float32)
    got3 = jax.block_until_ready(bce_with_logits_loss(x3, l3, o3))
    assert jnp.allclose(got3, _reference(x3, l3, o3), atol=1e-5, rtol=1e-5), \
        "ragged-grid mean mismatch"
    got3n = jax.block_until_ready(
        bce_with_logits_loss(x3, l3, o3, reduction="none"))
    assert jnp.allclose(got3n, _reference(x3, l3, o3, reduction="none"),
                        atol=1e-5, rtol=1e-5), "ragged-grid none mismatch"

    print("KERNEL_OK")
</pallas_src>

<mosaic_0001>
module attributes {stable_mosaic.version = 11 : i64} {
  func.func @_bce_reduce_kernel(%arg0: i32, %arg1: memref<16x128xf32, #tpu.memory_space<vmem>>, %arg2: memref<16x128xf32, #tpu.memory_space<vmem>>, %arg3: memref<16x128xf32, #tpu.memory_space<vmem>>, %arg4: memref<8x128xf32, #tpu.memory_space<vmem>>) attributes {dimension_semantics = [#tpu.dimension_semantics<parallel>], iteration_bounds = array<i64: 1>, scalar_prefetch = 0 : i64, scratch_operands = 0 : i64, tpu.core_type = #tpu.core_type<tc>, window_params = [{transform_indices = @transform_0, window_bounds = array<i64: 16, 128>}, {transform_indices = @transform_1, window_bounds = array<i64: 16, 128>}, {transform_indices = @transform_2, window_bounds = array<i64: 16, 128>}, {transform_indices = @transform_3, window_bounds = array<i64: 8, 128>}]} {
    %c16_i32 = arith.constant 16 : i32
    %0 = arith.muli %arg0, %c16_i32 : i32
    %c16_i32_0 = arith.constant 16 : i32
    %1 = arith.subi %c16_i32_0, %0 : i32
    %cst = arith.constant 0.000000e+00 : f32
    %2 = vector.broadcast %cst : f32 to vector<8x128xf32>
    %c0 = arith.constant 0 : index
    %c0_1 = arith.constant 0 : index
    %3 = vector.load %arg1[%c0, %c0_1] : memref<16x128xf32, #tpu.memory_space<vmem>>, vector<8x128xf32>
    %c0_2 = arith.constant 0 : index
    %c0_3 = arith.constant 0 : index
    %4 = vector.load %arg2[%c0_2, %c0_3] : memref<16x128xf32, #tpu.memory_space<vmem>>, vector<8x128xf32>
    %c0_4 = arith.constant 0 : index
    %c0_5 = arith.constant 0 : index
    %5 = vector.load %arg3[%c0_4, %c0_5] : memref<16x128xf32, #tpu.memory_space<vmem>>, vector<8x128xf32>
    %cst_6 = arith.constant 0.000000e+00 : f32
    %6 = vector.broadcast %cst_6 : f32 to vector<8x128xf32>
    %7 = arith.maximumf %3, %6 : vector<8x128xf32>
    %8 = arith.mulf %3, %4 : vector<8x128xf32>
    %9 = arith.subf %7, %8 : vector<8x128xf32>
    %10 = math.absf %3 : vector<8x128xf32>
    %cst_7 = arith.constant 0.000000e+00 : f32
    %11 = vector.broadcast %cst_7 : f32 to vector<8x128xf32>
    %12 = arith.subf %11, %10 : vector<8x128xf32>
    %13 = math.exp %12 : vector<8x128xf32>
    %cst_8 = arith.constant 1.000000e+00 : f32
    %14 = vector.broadcast %cst_8 : f32 to vector<8x128xf32>
    %15 = arith.addf %14, %13 : vector<8x128xf32>
    %16 = math.log %15 : vector<8x128xf32>
    %17 = arith.addf %9, %16 : vector<8x128xf32>
    %cst_9 = arith.constant 7.500000e-01 : f32
    %18 = vector.broadcast %cst_9 : f32 to vector<8x128xf32>
    %19 = arith.mulf %18, %5 : vector<8x128xf32>
    %cst_10 = arith.constant 2.500000e-01 : f32
    %20 = vector.broadcast %cst_10 : f32 to vector<8x128xf32>
    %21 = arith.addf %20, %19 : vector<8x128xf32>
    %22 = arith.mulf %17, %21 : vector<8x128xf32>
    %c0_i32 = arith.constant 0 : i32
    %23 = arith.cmpi sgt, %1, %c0_i32 : i32
    %cst_11 = arith.constant 0.000000e+00 : f32
    %24 = vector.broadcast %cst_11 : f32 to vector<8x128xf32>
    %25 = arith.select %23, %22, %24 : vector<8x128xf32>
    %26 = arith.addf %2, %25 : vector<8x128xf32>
    %c8 = arith.constant 8 : index
    %c0_12 = arith.constant 0 : index
    %27 = vector.load %arg1[%c8, %c0_12] : memref<16x128xf32, #tpu.memory_space<vmem>>, vector<8x128xf32>
    %c8_13 = arith.constant 8 : index
    %c0_14 = arith.constant 0 : index
    %28 = vector.load %arg2[%c8_13, %c0_14] : memref<16x128xf32, #tpu.memory_space<vmem>>, vector<8x128xf32>
    %c8_15 = arith.constant 8 : index
    %c0_16 = arith.constant 0 : index
    %29 = vector.load %arg3[%c8_15, %c0_16] : memref<16x128xf32, #tpu.memory_space<vmem>>, vector<8x128xf32>
    %cst_17 = arith.constant 0.000000e+00 : f32
    %30 = vector.broadcast %cst_17 : f32 to vector<8x128xf32>
    %31 = arith.maximumf %27, %30 : vector<8x128xf32>
    %32 = arith.mulf %27, %28 : vector<8x128xf32>
    %33 = arith.subf %31, %32 : vector<8x128xf32>
    %34 = math.absf %27 : vector<8x128xf32>
    %cst_18 = arith.constant 0.000000e+00 : f32
    %35 = vector.broadcast %cst_18 : f32 to vector<8x128xf32>
    %36 = arith.subf %35, %34 : vector<8x128xf32>
    %37 = math.exp %36 : vector<8x128xf32>
    %cst_19 = arith.constant 1.000000e+00 : f32
    %38 = vector.broadcast %cst_19 : f32 to vector<8x128xf32>
    %39 = arith.addf %38, %37 : vector<8x128xf32>
    %40 = math.log %39 : vector<8x128xf32>
    %41 = arith.addf %33, %40 : vector<8x128xf32>
    %cst_20 = arith.constant 7.500000e-01 : f32
    %42 = vector.broadcast %cst_20 : f32 to vector<8x128xf32>
    %43 = arith.mulf %42, %29 : vector<8x128xf32>
    %cst_21 = arith.constant 2.500000e-01 : f32
    %44 = vector.broadcast %cst_21 : f32 to vector<8x128xf32>
    %45 = arith.addf %44, %43 : vector<8x128xf32>
    %46 = arith.mulf %41, %45 : vector<8x128xf32>
    %c8_i32 = arith.constant 8 : i32
    %47 = arith.cmpi sgt, %1, %c8_i32 : i32
    %cst_22 = arith.constant 0.000000e+00 : f32
    %48 = vector.broadcast %cst_22 : f32 to vector<8x128xf32>
    %49 = arith.select %47, %46, %48 : vector<8x128xf32>
    %50 = arith.addf %2, %49 : vector<8x128xf32>
    %51 = arith.addf %26, %50 : vector<8x128xf32>
    %52 = arith.addf %2, %2 : vector<8x128xf32>
    %53 = arith.addf %51, %52 : vector<8x128xf32>
    %c0_23 = arith.constant 0 : index
    %c0_24 = arith.constant 0 : index
    %54 = vector.load %arg4[%c0_23, %c0_24] : memref<8x128xf32, #tpu.memory_space<vmem>>, vector<8x128xf32>
    tpu.vector_store %arg4[%c0_23, %c0_24], %53 {strides = array<i32>} : memref<8x128xf32, #tpu.memory_space<vmem>>, vector<8x128xf32>,
    return
  }
  func.func @transform_0(%arg0: i32) -> (i32, i32) {
    %c0_i32 = arith.constant 0 : i32
    %c0_i32_0 = arith.constant 0 : i32
    return %arg0, %c0_i32 : i32, i32
  }
  func.func @transform_1(%arg0: i32) -> (i32, i32) {
    %c0_i32 = arith.constant 0 : i32
    %c0_i32_0 = arith.constant 0 : i32
    return %arg0, %c0_i32 : i32, i32
  }
  func.func @transform_2(%arg0: i32) -> (i32, i32) {
    %c0_i32 = arith.constant 0 : i32
    %c0_i32_0 = arith.constant 0 : i32
    return %arg0, %c0_i32 : i32, i32
  }
  func.func @transform_3(%arg0: i32) -> (i32, i32) {
    %c0_i32 = arith.constant 0 : i32
    %c0_i32_0 = arith.constant 0 : i32
    return %arg0, %c0_i32 : i32, i32
  }
}

</mosaic_0001>

<bundles_post_ra>
// kernel: tpu_custom_call.1
= control target key start
LH: loop header
LB: loop body
LE: loop exit
PB: predicated region body
PF: predicated region fallthrough
CT: control target
= control target key end

     0   :  { %8 = vsyncpa [#allocation3], 0  ;;  %s285_s0 = inlined_call_operand.hbm [shape: f32[16,128], index: 0, kind: input, shape index: {}]   ;;  %s286_s1 = inlined_call_operand.hbm [shape: f32[16,128], index: 1, kind: input, shape index: {}]   ;;  %s287_s2 = inlined_call_operand.hbm [shape: f32[16,128], index: 2, kind: input, shape index: {}]   ;;  %s288_s3 = inlined_call_operand.hbm [shape: f32[8,128], index: 3, kind: output, shape index: {}]  }
   0x1   :  { %9 = vsyncpa [#allocation6], 0 }
   0x2   :  { %10 = vsyncpa [#allocation4], 0  ;;  %s28_s14 = sshll.u32 %s286_s1, 4  ;;  %s247_s15 = smov [#allocation5]   ;;  %s29_s14 = int_to_ptr.hbm [resolvable:$true] %s28_s14 }
   0x3   :  { %s30_s16 = sshll.u32 %s247_s15, 4  ;;  %s15_s19 = sshll.u32 %s285_s0, 4  ;;  %s31_s16 = int_to_ptr.vmem [resolvable:$true] %s30_s16  ;;  %s16_s19 = int_to_ptr.hbm [resolvable:$true] %s15_s19 }
   0x4   :  { %s248_s20 = smov 128   ;;  %s249_s21 = smov 8  }
   0x5   :  { %36 = dma.hbm_to_vmem [thread:$0]  %s29_s14, 256, %s31_s16, [#allocation6], %s248_s20, %s248_s20, %s249_s21  }
   0x6   :  { %s250_s22 = smov [#allocation2]   ;;  %s41_s26 = sshll.u32 %s287_s2, 4  ;;  %s42_s26 = int_to_ptr.hbm [resolvable:$true] %s41_s26 }
   0x7   :  { %s17_s23 = sshll.u32 %s250_s22, 4  ;;  %s251_s1 = smov [#allocation7]   ;;  %s18_s23 = int_to_ptr.vmem [resolvable:$true] %s17_s23 }
   0x8   :  { %23 = dma.hbm_to_vmem [thread:$0]  %s16_s19, 256, %s18_s23, [#allocation3], %s248_s20, %s248_s20, %s249_s21  }
   0x9   :  { %s43_s27 = sshll.u32 %s251_s1, 4  ;;  %s44_s27 = int_to_ptr.vmem [resolvable:$true] %s43_s27 }
   0xa   :  { %49 = dma.hbm_to_vmem [thread:$0]  %s42_s26, 256, %s44_s27, [#allocation6], %s248_s20, %s248_s20, %s249_s21  }
   0xb   :  { %241 = dma.done.wait [#allocation3], 256  }
   0xc   :  { %242 = vsyncadd [#allocation3], 4294967040 }
   0xd   :  { %243 = dma.done.wait [#allocation6], 512  }
   0xe   :  { %244 = vsyncadd [#allocation6], 4294966784  ;;  %v64_v0 = vld [vmem:[#allocation2] sm:$0xff]  ;;  %v87_v2 = vld [vmem:[#allocation2 + $0x8] sm:$0xff]  ;;  %s252_s0 = smov [#allocation8]   ;;  %s120_s30 = sshll.u32 %s288_s3, 4  ;;  %s121_s30 = int_to_ptr.hbm [resolvable:$true] %s120_s30 }
   0xf   :  { %v70_v1 = vand.u32 2147483647, %v64_v0  ;;  %v93_v3 = vand.u32 2147483647, %v87_v2  ;;  %v65_v10 = vld [vmem:[#allocation5] sm:$0xff]  ;;  %v88_v12 = vld [vmem:[#allocation5 + $0x8] sm:$0xff] }
  0x10   :  { %v66_v14 = vld [vmem:[#allocation7] sm:$0xff]  ;;  %v67_v15 = vmax.f32 %v64_v0, 0.0  ;;  %v68_v16 = vmul.f32 %v65_v10, %v64_v0  ;;  %v89_v17 = vld [vmem:[#allocation7 + $0x8] sm:$0xff]  ;;  %v90_v18 = vmax.f32 %v87_v2, 0.0  ;;  %v91_v19 = vmul.f32 %v88_v12, %v87_v2  ;;  %s118_s2 = sshll.u32 %s252_s0, 4  ;;  %s119_s2 = int_to_ptr.vmem [resolvable:$true] %s118_s2 }
  0x11   :  { %v71_v4 = vsub.f32 0.0, %v70_v1  ;;  %v94_v5 = vsub.f32 0.0, %v93_v3  ;;  %v78_v20 = vmul.f32 0.75, %v66_v14  ;;  %v101_v21 = vmul.f32 0.75, %v89_v17 }
  0x12   :  { %v69_v22 = vsub.f32 %v67_v15, %v68_v16  ;;  %v92_v24 = vsub.f32 %v90_v18, %v91_v19 }
  0x13   :  { %v72_v6 = vmul.f32 1.442695, %v71_v4  ;;  %v95_v7 = vmul.f32 1.442695, %v94_v5  ;;  %v79_v27 = vadd.f32 0.25, %v78_v20  ;;  %v102_v29 = vadd.f32 0.25, %v101_v21 }
  0x15   :  { %137 = vpow2.f32 %v72_v6 }
  0x16   :  { %139 = vpow2.f32 %v95_v7 }
  0x1b   :  { %v138_v8 = vpop.eup %137 }
  0x1c   :  { %v140_v9 = vpop.eup %139  ;;  %v74_v11 = vadd.f32 1.0, %v138_v8 }
  0x1d   :  { %v97_v13 = vadd.f32 1.0, %v140_v9 }
  0x1e   :  { %141 = vlog2.f32 %v74_v11 }
  0x1f   :  { %143 = vlog2.f32 %v97_v13 }
  0x24   :  { %v142_v23 = vpop.eup %141 }
  0x25   :  { %v144_v25 = vpop.eup %143  ;;  %v76_v26 = vmul.f32 0.6931472, %v142_v23 }
  0x26   :  { %v99_v28 = vmul.f32 0.6931472, %v144_v25 }
  0x27   :  { %v77_v30 = vadd.f32 %v76_v26, %v69_v22 }
  0x28   :  { %v100_v31 = vadd.f32 %v99_v28, %v92_v24 }
  0x29   :  { %v80_v32 = vmul.f32 %v79_v27, %v77_v30 }
  0x2a   :  { %v103_v33 = vmul.f32 %v102_v29, %v100_v31 }
  0x2c   :  { %v110_v34 = vadd.f32 %v103_v33, %v80_v32 }
  0x2e   :  { %112 = vst [vmem:[#allocation8] sm:$0xff] %v110_v34 }
  0x2f   :  { %123 = dma.vmem_to_hbm [thread:$0]  %s119_s2, 128, %s121_s30, [#allocation4]  }
  0x30   :  { %245 = dma.done.wait [#allocation4], 128  }
  0x31   :  { %246 = vsyncadd [#allocation4], 4294967168 }
  0x32   :  { %128 = vsyncpa [#allocation3], 1 }
  0x33   :  { %129 = vsyncpa [#allocation6], 1 }
  0x34   :  { %130 = vsyncpa [#allocation4], 1 }

</bundles_post_ra>
